<compile_context>
chip_gen: v7x
topology: tpu7x:2x2x1
jax: 0.10.0
libtpu: 0.0.40
codegen_flags: <defaults>
</compile_context>

<pallas_src>
import functools

import jax
import jax.numpy as jnp
from jax.experimental import pallas as pl
from jax.experimental.pallas import tpu as pltpu

_LANE = 128
_SUBLANE = 8


def _layernorm_kernel(x_ref, alpha_ref, bias_ref, o_ref, *, eps: float, d_true: int):
    x = x_ref[...].astype(jnp.float32)                 # (tile_rows, d_pad)
    d_pad = x.shape[-1]

    if d_true != d_pad:
        # Feature axis was zero-padded to a lane-dense multiple of 128;
        # keep the padded lanes out of the statistics.
        lane = jax.lax.broadcasted_iota(jnp.int32, x.shape, dimension=1)
        valid = lane < d_true
        x = jnp.where(valid, x, 0.0)

    mean = jnp.sum(x, axis=-1, keepdims=True) * (1.0 / d_true)
    diff = x - mean
    if d_true != d_pad:
        diff = jnp.where(valid, diff, 0.0)

    # torch.std default: unbiased estimator (ddof = 1); module adds eps to std.
    var = jnp.sum(diff * diff, axis=-1, keepdims=True) * (1.0 / (d_true - 1))
    std = jnp.sqrt(var)
    inv = pl.reciprocal(std + eps, approx=True)        # EUP slot, ~free

    alpha = alpha_ref[...].astype(jnp.float32)         # (1, d_pad), VMEM-resident
    bias = bias_ref[...].astype(jnp.float32)
    out = alpha * (diff * inv) + bias
    o_ref[...] = out.astype(o_ref.dtype)


def _round_up(n: int, m: int) -> int:
    return ((n + m - 1) // m) * m


def _choose_tile_rows(rows: int, d_pad: int, itemsize: int) -> int:
    # Aim for ~2 MiB of input per block: big enough to amortize the per-step
    # pipeline overhead of this purely mem-bound kernel (measured mem-bound
    # kernels reach ~85%+ of HBM roofline at 1-2 MiB blocks), small enough
    # that double-buffered in/out blocks plus f32 temporaries stay comfortably
    # under v7x's 32 MiB scoped VMEM.
    target_block_bytes = 2 * 1024 * 1024
    t = max(_SUBLANE, target_block_bytes // (d_pad * itemsize))
    t = min(t, 4096)
    t = (t // _SUBLANE) * _SUBLANE
    t = min(t, _round_up(rows, _SUBLANE))      # never tile beyond the problem
    return max(t, _SUBLANE)


def layer_normalization(x, alpha, bias, eps: float = 1e-6):
    """x: (batch, seq_len, dim); alpha, bias: (dim,). Returns same shape/dtype as x."""
    B, S, D = x.shape
    rows = B * S

    # Lane-dense feature axis (pad to a multiple of 128 only if needed).
    d_pad = _round_up(D, _LANE) if D % _LANE else D

    tile_rows = _choose_tile_rows(rows, d_pad, jnp.dtype(x.dtype).itemsize)
    rows_pad = _round_up(rows, tile_rows)

    x2 = x.reshape(rows, D)
    if rows_pad != rows or d_pad != D:
        x2 = jnp.pad(x2, ((0, rows_pad - rows), (0, d_pad - D)))
    alpha2 = jnp.pad(alpha, (0, d_pad - D)).reshape(1, d_pad)
    bias2 = jnp.pad(bias, (0, d_pad - D)).reshape(1, d_pad)

    kernel = functools.partial(_layernorm_kernel, eps=eps, d_true=D)

    out2 = pl.pallas_call(
        kernel,
        out_shape=jax.ShapeDtypeStruct((rows_pad, d_pad), x.dtype),
        grid_spec=pltpu.PrefetchScalarGridSpec(
            num_scalar_prefetch=0,
            grid=(rows_pad // tile_rows,),
            in_specs=[
                pl.BlockSpec((tile_rows, d_pad), lambda i: (i, 0)),
                # Constant operands: whole-array resident in VMEM, fetched once,
                # no per-step DMA or double-buffering.
                pl.BlockSpec(memory_space=pltpu.MemorySpace.VMEM),
                pl.BlockSpec(memory_space=pltpu.MemorySpace.VMEM),
            ],
            out_specs=pl.BlockSpec((tile_rows, d_pad), lambda i: (i, 0)),
        ),
        compiler_params=pltpu.CompilerParams(
            # Row tiles are independent -> grid steps shard across both
            # TensorCores on v7x.
            dimension_semantics=("parallel",),
            # Explicit scoped-VMEM budget: safe on v5e/v6e (128 MiB physical)
            # and within v7x's 64 MiB physical VMEM.
            vmem_limit_bytes=32 * 1024 * 1024,
        ),
    )(x2, alpha2, bias2)

    if rows_pad != rows or d_pad != D:
        out2 = out2[:rows, :D]
    return out2.reshape(B, S, D)


def _ref_layernorm(x, alpha, bias, eps):
    d = x.shape[-1]
    mean = jnp.mean(x, axis=-1, keepdims=True)
    std = jnp.sqrt(jnp.sum((x - mean) ** 2, axis=-1, keepdims=True) / (d - 1))
    return alpha * (x - mean) / (std + eps) + bias


if __name__ == "__main__":
    key = jax.random.PRNGKey(0)

    # Shapes implied by the module's forward: (batch, seq_len, dim).
    batch, seq, dim = 2, 8, 32
    x = jax.random.normal(key, (batch, seq, dim), dtype=jnp.float32)
    # Deterministic parameter init matching the module: ones / ones.
    alpha = jnp.ones((dim,), dtype=jnp.float32)
    bias = jnp.ones((dim,), dtype=jnp.float32)

    out = layer_normalization(x, alpha, bias, eps=1e-6)
    out = jax.block_until_ready(out)

    ref = _ref_layernorm(x, alpha, bias, 1e-6)
    # pl.reciprocal(approx=True) trades a few mantissa bits for the EUP slot;
    # tolerance relaxed accordingly.
    assert jnp.allclose(out, ref, atol=5e-3, rtol=5e-3), float(
        jnp.max(jnp.abs(out - ref))
    )

    # Also exercise the lane-dense (dim % 128 == 0, no masking) path.
    dim2 = 128
    key2 = jax.random.PRNGKey(1)
    x2 = jax.random.normal(key2, (batch, seq, dim2), dtype=jnp.float32)
    alpha2 = jnp.ones((dim2,), dtype=jnp.float32)
    bias2 = jnp.ones((dim2,), dtype=jnp.float32)
    out2 = jax.block_until_ready(layer_normalization(x2, alpha2, bias2, eps=1e-6))
    ref2 = _ref_layernorm(x2, alpha2, bias2, 1e-6)
    assert jnp.allclose(out2, ref2, atol=5e-3, rtol=5e-3), float(
        jnp.max(jnp.abs(out2 - ref2))
    )

    print("KERNEL_OK")
</pallas_src>

<mosaic_0001>
module attributes {stable_mosaic.version = 11 : i64} {
  func.func @_layernorm_kernel(%arg0: i32, %arg1: memref<16x128xf32, #tpu.memory_space<vmem>>, %arg2: memref<1x128xf32, #tpu.memory_space<vmem>>, %arg3: memref<1x128xf32, #tpu.memory_space<vmem>>, %arg4: memref<16x128xf32, #tpu.memory_space<vmem>>) attributes {dimension_semantics = [#tpu.dimension_semantics<parallel>], iteration_bounds = array<i64: 1>, scalar_prefetch = 0 : i64, scratch_operands = 0 : i64, tpu.core_type = #tpu.core_type<tc>, window_params = [{transform_indices = @transform_0, window_bounds = array<i64: 16, 128>}, {pipeline_mode = #tpu.pipeline_mode<synchronous>, transform_indices = @transform_1, window_bounds = array<i64: 1, 128>}, {pipeline_mode = #tpu.pipeline_mode<synchronous>, transform_indices = @transform_2, window_bounds = array<i64: 1, 128>}, {transform_indices = @transform_3, window_bounds = array<i64: 16, 128>}]} {
    %c0 = arith.constant 0 : index
    %c0_0 = arith.constant 0 : index
    %0 = vector.load %arg1[%c0, %c0_0] : memref<16x128xf32, #tpu.memory_space<vmem>>, vector<16x128xf32>
    %1 = tpu.iota {dimensions = array<i32: 1>} : vector<16x128xi32>
    %c32_i32 = arith.constant 32 : i32
    %2 = vector.broadcast %c32_i32 : i32 to vector<16x128xi32>
    %3 = arith.cmpi slt, %1, %2 : vector<16x128xi32>
    %cst = arith.constant 0.000000e+00 : f32
    %4 = vector.broadcast %cst : f32 to vector<16x128xf32>
    %5 = arith.select %3, %0, %4 : vector<16x128xi1>, vector<16x128xf32>
    %cst_1 = arith.constant dense<0.000000e+00> : vector<16xf32>
    %6 = vector.multi_reduction <add>, %5, %cst_1 [1] : vector<16x128xf32> to vector<16xf32>
    %7 = vector.shape_cast %6 : vector<16xf32> to vector<16x1xf32>
    %cst_2 = arith.constant 3.125000e-02 : f32
    %8 = vector.broadcast %cst_2 : f32 to vector<16x1xf32>
    %9 = arith.mulf %7, %8 : vector<16x1xf32>
    %10 = vector.broadcast %9 : vector<16x1xf32> to vector<16x128xf32>
    %11 = arith.subf %5, %10 : vector<16x128xf32>
    %cst_3 = arith.constant 0.000000e+00 : f32
    %12 = vector.broadcast %cst_3 : f32 to vector<16x128xf32>
    %13 = arith.select %3, %11, %12 : vector<16x128xi1>, vector<16x128xf32>
    %14 = arith.mulf %13, %13 : vector<16x128xf32>
    %cst_4 = arith.constant dense<0.000000e+00> : vector<16xf32>
    %15 = vector.multi_reduction <add>, %14, %cst_4 [1] : vector<16x128xf32> to vector<16xf32>
    %16 = vector.shape_cast %15 : vector<16xf32> to vector<16x1xf32>
    %cst_5 = arith.constant 0.0322580636 : f32
    %17 = vector.broadcast %cst_5 : f32 to vector<16x1xf32>
    %18 = arith.mulf %16, %17 : vector<16x1xf32>
    %19 = math.sqrt %18 : vector<16x1xf32>
    %cst_6 = arith.constant 9.99999997E-7 : f32
    %20 = vector.broadcast %cst_6 : f32 to vector<16x1xf32>
    %21 = arith.addf %19, %20 : vector<16x1xf32>
    %22 = tpu.reciprocal %21 {approx = true} : vector<16x1xf32> -> vector<16x1xf32>
    %c0_7 = arith.constant 0 : index
    %c0_8 = arith.constant 0 : index
    %23 = vector.load %arg2[%c0_7, %c0_8] : memref<1x128xf32, #tpu.memory_space<vmem>>, vector<1x128xf32>
    %c0_9 = arith.constant 0 : index
    %c0_10 = arith.constant 0 : index
    %24 = vector.load %arg3[%c0_9, %c0_10] : memref<1x128xf32, #tpu.memory_space<vmem>>, vector<1x128xf32>
    %25 = vector.broadcast %22 : vector<16x1xf32> to vector<16x128xf32>
    %26 = arith.mulf %13, %25 : vector<16x128xf32>
    %27 = vector.broadcast %23 : vector<1x128xf32> to vector<16x128xf32>
    %28 = arith.mulf %27, %26 : vector<16x128xf32>
    %29 = vector.broadcast %24 : vector<1x128xf32> to vector<16x128xf32>
    %30 = arith.addf %28, %29 : vector<16x128xf32>
    %c0_11 = arith.constant 0 : index
    %c0_12 = arith.constant 0 : index
    %31 = vector.load %arg4[%c0_11, %c0_12] : memref<16x128xf32, #tpu.memory_space<vmem>>, vector<16x128xf32>
    tpu.vector_store %arg4[%c0_11, %c0_12], %30 {strides = array<i32>} : memref<16x128xf32, #tpu.memory_space<vmem>>, vector<16x128xf32>,
    return
  }
  func.func @transform_0(%arg0: i32) -> (i32, i32) {
    %c0_i32 = arith.constant 0 : i32
    %c0_i32_0 = arith.constant 0 : i32
    return %arg0, %c0_i32 : i32, i32
  }
  func.func @transform_1(%arg0: i32) -> (i32, i32) {
    %c0_i32 = arith.constant 0 : i32
    %c0_i32_0 = arith.constant 0 : i32
    %c0_i32_1 = arith.constant 0 : i32
    return %c0_i32, %c0_i32_0 : i32, i32
  }
  func.func @transform_2(%arg0: i32) -> (i32, i32) {
    %c0_i32 = arith.constant 0 : i32
    %c0_i32_0 = arith.constant 0 : i32
    %c0_i32_1 = arith.constant 0 : i32
    return %c0_i32, %c0_i32_0 : i32, i32
  }
  func.func @transform_3(%arg0: i32) -> (i32, i32) {
    %c0_i32 = arith.constant 0 : i32
    %c0_i32_0 = arith.constant 0 : i32
    return %arg0, %c0_i32 : i32, i32
  }
}

</mosaic_0001>

<bundles_post_ra>
// kernel: tpu_custom_call.1
= control target key start
LH: loop header
LB: loop body
LE: loop exit
PB: predicated region body
PF: predicated region fallthrough
CT: control target
= control target key end

     0   :  { %8 = vsyncpa [#allocation3], 0  ;;  %s237_s0 = inlined_call_operand.hbm [shape: f32[16,128], index: 0, kind: input, shape index: {}]   ;;  %s238_s1 = inlined_call_operand.vmem [shape: f32[1,128], index: 1, kind: input, shape index: {}]   ;;  %s239_s2 = inlined_call_operand.vmem [shape: f32[1,128], index: 2, kind: input, shape index: {}]   ;;  %s240_s3 = inlined_call_operand.hbm [shape: f32[16,128], index: 3, kind: output, shape index: {}]  }
   0x1   :  { %9 = vsyncpa [#allocation4], 0  ;;  %s173_s12 = smov [#allocation2]   ;;  %s125_s16 = scalar_lea.hbm %s237_s0, 256 }
   0x2   :  { %s15_s13 = sshll.u32 %s173_s12, 4  ;;  %p126_p0 = scmp.ne.s32.totalorder %s237_s0, %s125_s16  ;;  %s16_s13 = int_to_ptr.vmem [resolvable:$true] %s15_s13 }
   0x3   :  { %p129_p1 = scmp.lt.u32.totalorder %s125_s16, %s237_s0 }
   0x5   :  { %p131_p2 = pnand %p129_p1, %p126_p0 }
   0x7   :  { %134 = shalt.err (!%p131_p2)
}
   0x8   :  { %s135_s21 = scalar_lea.vmem %s16_s13, 256  ;;  %p140_p4 = scmp.lt.s32.totalorder %s16_s13, %s16_s13 }
   0x9   :  { %p136_p3 = scmp.ne.s32.totalorder %s16_s13, %s135_s21  ;;  %p141_p5 = scmp.lt.s32.totalorder %s135_s21, %s135_s21 }
   0xb   :  { %p142_p6 = por %p141_p5, %p140_p4 }
   0xd   :  { %p143_p7 = pnand %p142_p6, %p136_p3 }
   0xf   :  { %146 = shalt.err (!%p143_p7)
}
  0x10   :  { %s174_s22 = smov 128   ;;  %s175_s23 = smov 8  }
  0x11   :  { %21 = dma.hbm_to_vmem [thread:$0]  %s237_s0, 256, %s16_s13, [#allocation3], %s174_s22, %s174_s22, %s175_s23  }
  0x12   :  { %169 = dma.done.wait [#allocation3], 256  }
  0x13   :  { %170 = vsyncadd [#allocation3], 4294967040  ;;  %v31_v0 = vlaneseq  ;;  %v29_v2 = vld [vmem:[#allocation2] sm:$0xff]  ;;  %v30_v3 = vld [vmem:[#allocation2 + $0x8] sm:$0xff]  ;;  %s176_s29 = smov [#allocation5]  }
  0x14   :  { %v111_v33 = vld [vmem:[%s238_s1] ss:$0 sm:$0xff]  ;;  %s99_s30 = sshll.u32 %s176_s29, 4  ;;  %s100_s30 = int_to_ptr.vmem [resolvable:$true] %s99_s30 }
  0x15   :  { %v32_v1 = vand.u32 127, %v31_v0  ;;  %v112_v35 = vld [vmem:[%s239_s2] ss:$0 sm:$0xff]  ;;  %s147_s4 = scalar_lea.vmem %s100_s30, 256  ;;  %p152_p9 = scmp.lt.s32.totalorder %s100_s30, %s100_s30 }
  0x16   :  { %p148_p8 = scmp.ne.s32.totalorder %s100_s30, %s147_s4  ;;  %p153_p10 = scmp.lt.s32.totalorder %s147_s4, %s147_s4 }
  0x17   :  { %vm33_vm0 = vcmp.lt.s32.totalorder %v32_v1, 32 }
  0x18   :  { %v34_v4 = vsel %vm33_vm0, %v29_v2, 0.0  ;;  %v35_v5 = vsel %vm33_vm0, %v30_v3, 0.0  ;;  %p154_p11 = por %p153_p10, %p152_p9 }
  0x19   :  { %36 = vadd.xlane.f32.xlu0 %v34_v4 }
  0x1a   :  { %p155_p12 = pnand %p154_p11, %p148_p8 }
  0x1d   :  { %38 = vadd.xlane.f32.xlu0 %v35_v5 }
  0xa6   :  { %v37_v6 = vpop.xlane.xlu0 %36 }
  0xa7   :  { %v40_v7 = vmul.f32 0.03125, %v37_v6 }
  0xa9   :  { %v42_v8 = vsub.f32 %v34_v4, %v40_v7 }
  0xaa   :  { %v39_v9 = vpop.xlane.xlu0 %38 }
  0xab   :  { %v41_v10 = vmul.f32 0.03125, %v39_v9  ;;  %v44_v11 = vsel %vm33_vm0, %v42_v8, 0.0 }
  0xac   :  { %v46_v12 = vmul.f32 %v44_v11, %v44_v11 }
  0xad   :  { %v43_v13 = vsub.f32 %v35_v5, %v41_v10 }
  0xae   :  { %48 = vadd.xlane.f32.xlu1 %v46_v12 }
  0xaf   :  { %v45_v14 = vsel %vm33_vm0, %v43_v13, 0.0 }
  0xb0   :  { %v47_v15 = vmul.f32 %v45_v14, %v45_v14 }
  0xb2   :  { %50 = vadd.xlane.f32.xlu1 %v47_v15 }
 0x13b   :  { %v49_v16 = vpop.xlane.xlu1 %48 }
 0x13c   :  { %v52_v17 = vmul.f32 0.032258064, %v49_v16 }
 0x13e   :  { %117 = vrsqrt.f32 %v52_v17  ;;  %vm56_vm1 = vcmp.eq.f32.partialorder %v52_v17, inf  ;;  %v59_v22 = vand.u32 2147483648, %v52_v17  ;;  %vm58_vm2 = vcmp.eq.f32.partialorder %v52_v17, 0.0 }
 0x13f   :  { %v51_v18 = vpop.xlane.xlu1 %50 }
 0x140   :  { %v53_v19 = vmul.f32 0.032258064, %v51_v18 }
 0x142   :  { %119 = vrsqrt.f32 %v53_v19  ;;  %vm63_vm3 = vcmp.eq.f32.partialorder %v53_v19, inf  ;;  %v66_v28 = vand.u32 2147483648, %v53_v19  ;;  %vm65_vm4 = vcmp.eq.f32.partialorder %v53_v19, 0.0 }
 0x148   :  { %v118_v20 = vpop.eup %117 }
 0x149   :  { %v55_v21 = vmul.f32 %v118_v20, %v52_v17 }
 0x14b   :  { %v57_v23 = vsel %vm56_vm1, %v52_v17, %v55_v21 }
 0x14c   :  { %v120_v24 = vpop.eup %119  ;;  %v60_v25 = vsel %vm58_vm2, %v59_v22, %v57_v23 }
 0x14d   :  { %v62_v26 = vmul.f32 %v120_v24, %v53_v19  ;;  %v68_v27 = vadd.f32 1e-06, %v60_v25 }
 0x14f   :  { %v64_v29 = vsel %vm63_vm3, %v53_v19, %v62_v26  ;;  %121 = vrcp.f32 %v68_v27 }
 0x150   :  { %v67_v30 = vsel %vm65_vm4, %v66_v28, %v64_v29 }
 0x151   :  { %v69_v31 = vadd.f32 1e-06, %v67_v30 }
 0x153   :  { %123 = vrcp.f32 %v69_v31 }
 0x159   :  { %v122_v32 = vpop.eup %121 }
 0x15a   :  { %v74_v34 = vmul.f32 %v122_v32, %v44_v11 }
 0x15c   :  { %v82_v36 = vmul.f32 %v111_v33, %v74_v34 }
 0x15d   :  { %v124_v37 = vpop.eup %123 }
 0x15e   :  { %v75_v38 = vmul.f32 %v124_v37, %v45_v14  ;;  %v90_v39 = vadd.f32 %v112_v35, %v82_v36 }
 0x160   :  { %v83_v40 = vmul.f32 %v111_v33, %v75_v38  ;;  %92 = vst [vmem:[#allocation5] sm:$0xff] %v90_v39 }
 0x162   :  { %v91_v41 = vadd.f32 %v112_v35, %v83_v40 }
 0x164   :  { %93 = vst [vmem:[#allocation5 + $0x8] sm:$0xff] %v91_v41 }
 0x165   :  { %158 = shalt.err (!%p155_p12)
}
 0x166   :  { %s159_s5 = scalar_lea.hbm %s240_s3, 256 }
 0x167   :  { %p160_p13 = scmp.ne.s32.totalorder %s240_s3, %s159_s5  ;;  %p163_p0 = scmp.lt.u32.totalorder %s159_s5, %s240_s3 }
 0x169   :  { %p165_p1 = pnand %p163_p0, %p160_p13 }
 0x16b   :  { %168 = shalt.err (!%p165_p1)
}
 0x16c   :  { %105 = dma.vmem_to_hbm [thread:$0]  %s100_s30, 256, %s240_s3, [#allocation4], %s174_s22, %s174_s22, %s175_s23  }
 0x16d   :  { %171 = dma.done.wait [#allocation4], 256  }
 0x16e   :  { %172 = vsyncadd [#allocation4], 4294967040 }
 0x16f   :  { %109 = vsyncpa [#allocation3], 1 }
 0x170   :  { %110 = vsyncpa [#allocation4], 1 }

</bundles_post_ra>
